<compile_context>
chip_gen: v6e
topology: v6e:2x2x1
jax: 0.10.0
libtpu: 0.0.40
codegen_flags: <defaults>
</compile_context>

<pallas_src>
import math
from functools import partial

import jax
import jax.numpy as jnp
from jax.experimental import pallas as pl
from jax.experimental.pallas import tpu as pltpu


def _self_attention_kernel(x_ref, wqkv_ref, bqkv_ref, wp_ref, bp_ref, o_ref,
                           *, batch, seq, n_head):
    B, T, H = batch, seq, n_head
    x = x_ref[...]                                   # (B*T, C), bf16
    BT, C = x.shape
    D = C // H

    # Fused QKV projection: single wide MXU matmul, bf16 operands, f32 accumulation.
    # The 1/sqrt(D) attention scale is already folded into the q third of wqkv/bqkv.
    qkv = jnp.dot(x, wqkv_ref[...], preferred_element_type=jnp.float32) + bqkv_ref[0]

    # bf16 operands for the attention matmuls; softmax arithmetic stays f32.
    qb = qkv[:, 0 * C:1 * C].astype(jnp.bfloat16)
    kb = qkv[:, 1 * C:2 * C].astype(jnp.bfloat16)
    vb = qkv[:, 2 * C:3 * C].astype(jnp.bfloat16)

    # Attention per (batch, head) using static row/lane slices — no reshape relayouts,
    # no middle-batch-dim einsums (which force XLU transposes before the MXU).
    batch_rows = []
    for b in range(B):
        r = slice(b * T, (b + 1) * T)
        head_cols = []
        for h in range(H):
            c = slice(h * D, (h + 1) * D)
            q_bh = qb[r, c]                          # (T, D) bf16
            k_bh = kb[r, c]                          # (T, D) bf16
            v_bh = vb[r, c]                          # (T, D) bf16

            # scores = q @ k^T (scale pre-folded into q), f32 accumulation
            s = jax.lax.dot_general(
                q_bh, k_bh, (((1,), (1,)), ((), ())),
                preferred_element_type=jnp.float32)   # (T, T) f32

            # numerically stable softmax over keys (exp + approx recip -> EUP slot)
            s = s - jnp.max(s, axis=-1, keepdims=True)
            p = jnp.exp(s)
            p = p * pl.reciprocal(jnp.sum(p, axis=-1, keepdims=True), approx=True)

            # weighted values; cast once to bf16 for the output projection
            y_bh = jnp.dot(p.astype(jnp.bfloat16), v_bh,
                           preferred_element_type=jnp.float32)   # (T, D) f32
            head_cols.append(y_bh.astype(jnp.bfloat16))
        batch_rows.append(jnp.concatenate(head_cols, axis=1))    # (T, C) bf16
    y = jnp.concatenate(batch_rows, axis=0)                      # (B*T, C) bf16

    # Output projection (bf16 operands, f32 accumulation) + bias.
    out = jnp.dot(y, wp_ref[...], preferred_element_type=jnp.float32) + bp_ref[0]
    o_ref[...] = out.astype(o_ref.dtype)


def self_attention(x, prep, n_head):
    """x: (B, T, C) float32.  prep: dict from prepare_params()."""
    B, T, C = x.shape
    assert C % n_head == 0
    D = C // n_head
    BT = B * T

    # One grid step over the whole (tiny) problem: flatten batch so the QKV matmul is a
    # single (B*T, C) x (C, 3C) push and no per-batch pipeline overhead is paid.
    x2d = x.reshape(BT, C).astype(jnp.bfloat16)   # halves activation DMA; MXU runs bf16

    kernel = partial(_self_attention_kernel, batch=B, seq=T, n_head=n_head)

    flops = (2 * BT * C * 3 * C                 # fused QKV projection
             + 2 * B * n_head * T * T * D       # q k^T
             + 2 * B * n_head * T * T * D       # att @ v
             + 2 * BT * C * C)                  # output projection
    transcendentals = B * n_head * T * T        # exp in softmax
    bytes_accessed = (BT * C * 2 + BT * C * 4           # activations in (bf16) / out (f32)
                      + (C * 3 * C + C * C) * 2         # bf16 weights
                      + (3 * C + C) * 4)                # f32 biases

    out2d = pl.pallas_call(
        kernel,
        out_shape=jax.ShapeDtypeStruct((BT, C), x.dtype),
        grid_spec=pltpu.PrefetchScalarGridSpec(
            num_scalar_prefetch=0,
            grid=(1,),   # everything fits VMEM at these sizes; single step
            in_specs=[pl.BlockSpec((BT, C), lambda i: (0, 0)),       # activations
                      pl.BlockSpec((C, 3 * C), lambda i: (0, 0)),    # fused qkv weight
                      pl.BlockSpec((1, 3 * C), lambda i: (0, 0)),    # fused qkv bias
                      pl.BlockSpec((C, C), lambda i: (0, 0)),        # proj weight
                      pl.BlockSpec((1, C), lambda i: (0, 0))],       # proj bias
            out_specs=pl.BlockSpec((BT, C), lambda i: (0, 0)),
        ),
        compiler_params=pltpu.CompilerParams(
            dimension_semantics=("arbitrary",)),   # single step: nothing to shard
        cost_estimate=pl.CostEstimate(flops=flops,
                                      transcendentals=transcendentals,
                                      bytes_accessed=bytes_accessed),
    )(x2d, prep["wqkv"], prep["bqkv"], prep["wp"], prep["bp"])

    return out2d.reshape(B, T, C)


def prepare_params(raw, n_head, n_embd):
    """Fold the attention scale into q, fuse QKV weights/biases, cast MXU weights to bf16."""
    C = n_embd
    D = C // n_head
    scale = 1.0 / math.sqrt(D)
    wqkv = jnp.concatenate([raw["wq_t"] * scale, raw["wk_t"], raw["wv_t"]], axis=1)  # (C, 3C)
    bqkv = jnp.concatenate([raw["bq"] * scale, raw["bk"], raw["bv"]], axis=1)        # (1, 3C)
    return dict(
        wqkv=wqkv.astype(jnp.bfloat16),
        bqkv=bqkv.astype(jnp.float32),
        wp=raw["wp_t"].astype(jnp.bfloat16),
        bp=raw["bp"].astype(jnp.float32),
    )


def _reference_matched(x, prep, n_head):
    """Same math as the kernel (bf16 matmul operands, f32 acc, exact softmax recip)."""
    B, T, C = x.shape
    D = C // n_head
    xb = x.astype(jnp.bfloat16)
    qkv = jnp.einsum('btc,cf->btf', xb, prep["wqkv"],
                     preferred_element_type=jnp.float32) + prep["bqkv"][0]
    q, k, v = qkv[..., :C], qkv[..., C:2 * C], qkv[..., 2 * C:]
    qh = q.reshape(B, T, n_head, D).astype(jnp.bfloat16)
    kh = k.reshape(B, T, n_head, D).astype(jnp.bfloat16)
    vh = v.reshape(B, T, n_head, D).astype(jnp.bfloat16)
    att = jnp.einsum('bthd,bshd->bhts', qh, kh,
                     preferred_element_type=jnp.float32)   # scale folded into q
    att = jax.nn.softmax(att, axis=-1)
    y = jnp.einsum('bhts,bshd->bthd', att.astype(jnp.bfloat16), vh,
                   preferred_element_type=jnp.float32)
    y = y.astype(jnp.bfloat16).reshape(B, T, C)
    return jnp.einsum('btc,cf->btf', y, prep["wp"],
                      preferred_element_type=jnp.float32) + prep["bp"][0]


def _reference_f32(x, raw, n_head):
    """Pure f32 reference of the original module forward (loose sanity check)."""
    B, T, C = x.shape
    D = C // n_head
    q = x @ raw["wq_t"] + raw["bq"][0]
    k = x @ raw["wk_t"] + raw["bk"][0]
    v = x @ raw["wv_t"] + raw["bv"][0]
    qh = q.reshape(B, T, n_head, D).transpose(0, 2, 1, 3)
    kh = k.reshape(B, T, n_head, D).transpose(0, 2, 1, 3)
    vh = v.reshape(B, T, n_head, D).transpose(0, 2, 1, 3)
    att = jnp.einsum('bhtd,bhsd->bhts', qh, kh) / math.sqrt(D)
    att = jax.nn.softmax(att, axis=-1)
    y = jnp.einsum('bhts,bhsd->bhtd', att, vh)
    y = y.transpose(0, 2, 1, 3).reshape(B, T, C)
    return y @ raw["wp_t"] + raw["bp"][0]


if __name__ == "__main__":
    # Small config consistent with the module: n_embd=32, n_head=4, T=8 (<= block_size).
    B, T, C, H = 2, 8, 32, 4

    key = jax.random.PRNGKey(0)
    ks = jax.random.split(key, 9)

    def init_linear(kw, kb, fan_in):
        # nn.Linear default init: U(-1/sqrt(fan_in), 1/sqrt(fan_in)); weight is (out, in).
        bound = 1.0 / math.sqrt(fan_in)
        w = jax.random.uniform(kw, (C, C), jnp.float32, -bound, bound)   # (out, in)
        b = jax.random.uniform(kb, (1, C), jnp.float32, -bound, bound)
        return w.T, b   # store transposed so y = x @ W^T is a plain matmul

    wq_t, bq = init_linear(ks[0], ks[1], C)
    wk_t, bk = init_linear(ks[2], ks[3], C)
    wv_t, bv = init_linear(ks[4], ks[5], C)
    wp_t, bp = init_linear(ks[6], ks[7], C)
    raw = dict(wq_t=wq_t, bq=bq, wk_t=wk_t, bk=bk,
               wv_t=wv_t, bv=bv, wp_t=wp_t, bp=bp)
    prep = prepare_params(raw, n_head=H, n_embd=C)

    x = jax.random.normal(ks[8], (B, T, C), jnp.float32)

    out = self_attention(x, prep, n_head=H)
    out = jax.block_until_ready(out)
    assert out.shape == (B, T, C)

    # Tight check vs. a reference doing the same bf16/f32 math (differences: approx
    # reciprocal in-kernel and accumulation order).
    ref_m = _reference_matched(x, prep, n_head=H)
    assert jnp.allclose(out, ref_m, atol=2e-2, rtol=2e-2), "mismatch vs matched reference"

    # Loose check vs. the full-f32 module semantics (bf16 MXU operands cost ~1e-2 rel).
    ref_f = _reference_f32(x, raw, n_head=H)
    assert jnp.allclose(out, ref_f, atol=5e-2, rtol=5e-2), "mismatch vs f32 reference"

    # TODO(synk): attn_pdrop / resid_pdrop dropout omitted (identity at inference);
    # the registered causal `mask` buffer is unused in the provided forward().
    print("KERNEL_OK")
</pallas_src>

<mosaic_0001>
module attributes {stable_mosaic.version = 11 : i64} {
  func.func @_self_attention_kernel(%arg0: i32, %arg1: memref<16x32xbf16, #tpu.memory_space<vmem>>, %arg2: memref<32x96xbf16, #tpu.memory_space<vmem>>, %arg3: memref<1x96xf32, #tpu.memory_space<vmem>>, %arg4: memref<32x32xbf16, #tpu.memory_space<vmem>>, %arg5: memref<1x32xf32, #tpu.memory_space<vmem>>, %arg6: memref<16x32xf32, #tpu.memory_space<vmem>>) attributes {dimension_semantics = [#tpu.dimension_semantics<arbitrary>], iteration_bounds = array<i64: 1>, scalar_prefetch = 0 : i64, scratch_operands = 0 : i64, tpu.core_type = #tpu.core_type<tc>, window_params = [{pipeline_mode = #tpu.pipeline_mode<synchronous>, transform_indices = @transform_0, window_bounds = array<i64: 16, 32>}, {pipeline_mode = #tpu.pipeline_mode<synchronous>, transform_indices = @transform_1, window_bounds = array<i64: 32, 96>}, {pipeline_mode = #tpu.pipeline_mode<synchronous>, transform_indices = @transform_2, window_bounds = array<i64: 1, 96>}, {pipeline_mode = #tpu.pipeline_mode<synchronous>, transform_indices = @transform_3, window_bounds = array<i64: 32, 32>}, {pipeline_mode = #tpu.pipeline_mode<synchronous>, transform_indices = @transform_4, window_bounds = array<i64: 1, 32>}, {pipeline_mode = #tpu.pipeline_mode<synchronous>, transform_indices = @transform_5, window_bounds = array<i64: 16, 32>}]} {
    %c0 = arith.constant 0 : index
    %c0_0 = arith.constant 0 : index
    %0 = vector.load %arg1[%c0, %c0_0] : memref<16x32xbf16, #tpu.memory_space<vmem>>, vector<16x32xbf16>
    %c0_1 = arith.constant 0 : index
    %c0_2 = arith.constant 0 : index
    %1 = vector.load %arg2[%c0_1, %c0_2] : memref<32x96xbf16, #tpu.memory_space<vmem>>, vector<32x96xbf16>
    %cst = arith.constant dense<0.000000e+00> : vector<16x96xf32>
    %2 = tpu.matmul %0, %1, %cst {dimension_numbers = #tpu.dot_dimension_numbers<[1], [0], [0], [1], [0, 0, 1, 1], [], []>} : vector<16x32xbf16>, vector<32x96xbf16>, vector<16x96xf32> -> vector<16x96xf32>
    %c0_3 = arith.constant 0 : index
    %c0_4 = arith.constant 0 : index
    %3 = vector.load %arg3[%c0_3, %c0_4] : memref<1x96xf32, #tpu.memory_space<vmem>>, vector<1x96xf32>
    %4 = vector.shape_cast %3 : vector<1x96xf32> to vector<96xf32>
    %5 = vector.shape_cast %4 : vector<96xf32> to vector<1x96xf32>
    %6 = vector.broadcast %5 : vector<1x96xf32> to vector<16x96xf32>
    %7 = arith.addf %2, %6 : vector<16x96xf32>
    %8 = vector.extract_strided_slice %7 {offsets = [0, 0], sizes = [16, 32], strides = [1, 1]} : vector<16x96xf32> to vector<16x32xf32>
    %9 = arith.truncf %8 : vector<16x32xf32> to vector<16x32xbf16>
    %10 = vector.extract_strided_slice %7 {offsets = [0, 32], sizes = [16, 32], strides = [1, 1]} : vector<16x96xf32> to vector<16x32xf32>
    %11 = arith.truncf %10 : vector<16x32xf32> to vector<16x32xbf16>
    %12 = vector.extract_strided_slice %7 {offsets = [0, 64], sizes = [16, 32], strides = [1, 1]} : vector<16x96xf32> to vector<16x32xf32>
    %13 = arith.truncf %12 : vector<16x32xf32> to vector<16x32xbf16>
    %14 = vector.extract_strided_slice %9 {offsets = [0, 0], sizes = [8, 8], strides = [1, 1]} : vector<16x32xbf16> to vector<8x8xbf16>
    %15 = vector.extract_strided_slice %11 {offsets = [0, 0], sizes = [8, 8], strides = [1, 1]} : vector<16x32xbf16> to vector<8x8xbf16>
    %16 = vector.extract_strided_slice %13 {offsets = [0, 0], sizes = [8, 8], strides = [1, 1]} : vector<16x32xbf16> to vector<8x8xbf16>
    %cst_5 = arith.constant dense<0.000000e+00> : vector<8x8xf32>
    %17 = tpu.matmul %14, %15, %cst_5 {dimension_numbers = #tpu.dot_dimension_numbers<[1], [1], [0], [0], [0, 0, 1, 0], [], []>} : vector<8x8xbf16>, vector<8x8xbf16>, vector<8x8xf32> -> vector<8x8xf32>
    %cst_6 = arith.constant dense<0xFF800000> : vector<8xf32>
    %18 = vector.multi_reduction <maximumf>, %17, %cst_6 [1] : vector<8x8xf32> to vector<8xf32>
    %19 = vector.shape_cast %18 : vector<8xf32> to vector<8x1xf32>
    %20 = vector.broadcast %19 : vector<8x1xf32> to vector<8x8xf32>
    %21 = arith.subf %17, %20 : vector<8x8xf32>
    %22 = math.exp %21 : vector<8x8xf32>
    %cst_7 = arith.constant dense<0.000000e+00> : vector<8xf32>
    %23 = vector.multi_reduction <add>, %22, %cst_7 [1] : vector<8x8xf32> to vector<8xf32>
    %24 = vector.shape_cast %23 : vector<8xf32> to vector<8x1xf32>
    %25 = tpu.reciprocal %24 {approx = true} : vector<8x1xf32> -> vector<8x1xf32>
    %26 = vector.broadcast %25 : vector<8x1xf32> to vector<8x8xf32>
    %27 = arith.mulf %22, %26 : vector<8x8xf32>
    %28 = arith.truncf %27 : vector<8x8xf32> to vector<8x8xbf16>
    %cst_8 = arith.constant dense<0.000000e+00> : vector<8x8xf32>
    %29 = tpu.matmul %28, %16, %cst_8 {dimension_numbers = #tpu.dot_dimension_numbers<[1], [0], [0], [1], [0, 0, 1, 1], [], []>} : vector<8x8xbf16>, vector<8x8xbf16>, vector<8x8xf32> -> vector<8x8xf32>
    %30 = arith.truncf %29 : vector<8x8xf32> to vector<8x8xbf16>
    %31 = vector.extract_strided_slice %9 {offsets = [0, 8], sizes = [8, 8], strides = [1, 1]} : vector<16x32xbf16> to vector<8x8xbf16>
    %32 = vector.extract_strided_slice %11 {offsets = [0, 8], sizes = [8, 8], strides = [1, 1]} : vector<16x32xbf16> to vector<8x8xbf16>
    %33 = vector.extract_strided_slice %13 {offsets = [0, 8], sizes = [8, 8], strides = [1, 1]} : vector<16x32xbf16> to vector<8x8xbf16>
    %cst_9 = arith.constant dense<0.000000e+00> : vector<8x8xf32>
    %34 = tpu.matmul %31, %32, %cst_9 {dimension_numbers = #tpu.dot_dimension_numbers<[1], [1], [0], [0], [0, 0, 1, 0], [], []>} : vector<8x8xbf16>, vector<8x8xbf16>, vector<8x8xf32> -> vector<8x8xf32>
    %cst_10 = arith.constant dense<0xFF800000> : vector<8xf32>
    %35 = vector.multi_reduction <maximumf>, %34, %cst_10 [1] : vector<8x8xf32> to vector<8xf32>
    %36 = vector.shape_cast %35 : vector<8xf32> to vector<8x1xf32>
    %37 = vector.broadcast %36 : vector<8x1xf32> to vector<8x8xf32>
    %38 = arith.subf %34, %37 : vector<8x8xf32>
    %39 = math.exp %38 : vector<8x8xf32>
    %cst_11 = arith.constant dense<0.000000e+00> : vector<8xf32>
    %40 = vector.multi_reduction <add>, %39, %cst_11 [1] : vector<8x8xf32> to vector<8xf32>
    %41 = vector.shape_cast %40 : vector<8xf32> to vector<8x1xf32>
    %42 = tpu.reciprocal %41 {approx = true} : vector<8x1xf32> -> vector<8x1xf32>
    %43 = vector.broadcast %42 : vector<8x1xf32> to vector<8x8xf32>
    %44 = arith.mulf %39, %43 : vector<8x8xf32>
    %45 = arith.truncf %44 : vector<8x8xf32> to vector<8x8xbf16>
    %cst_12 = arith.constant dense<0.000000e+00> : vector<8x8xf32>
    %46 = tpu.matmul %45, %33, %cst_12 {dimension_numbers = #tpu.dot_dimension_numbers<[1], [0], [0], [1], [0, 0, 1, 1], [], []>} : vector<8x8xbf16>, vector<8x8xbf16>, vector<8x8xf32> -> vector<8x8xf32>
    %47 = arith.truncf %46 : vector<8x8xf32> to vector<8x8xbf16>
    %48 = vector.extract_strided_slice %9 {offsets = [0, 16], sizes = [8, 8], strides = [1, 1]} : vector<16x32xbf16> to vector<8x8xbf16>
    %49 = vector.extract_strided_slice %11 {offsets = [0, 16], sizes = [8, 8], strides = [1, 1]} : vector<16x32xbf16> to vector<8x8xbf16>
    %50 = vector.extract_strided_slice %13 {offsets = [0, 16], sizes = [8, 8], strides = [1, 1]} : vector<16x32xbf16> to vector<8x8xbf16>
    %cst_13 = arith.constant dense<0.000000e+00> : vector<8x8xf32>
    %51 = tpu.matmul %48, %49, %cst_13 {dimension_numbers = #tpu.dot_dimension_numbers<[1], [1], [0], [0], [0, 0, 1, 0], [], []>} : vector<8x8xbf16>, vector<8x8xbf16>, vector<8x8xf32> -> vector<8x8xf32>
    %cst_14 = arith.constant dense<0xFF800000> : vector<8xf32>
    %52 = vector.multi_reduction <maximumf>, %51, %cst_14 [1] : vector<8x8xf32> to vector<8xf32>
    %53 = vector.shape_cast %52 : vector<8xf32> to vector<8x1xf32>
    %54 = vector.broadcast %53 : vector<8x1xf32> to vector<8x8xf32>
    %55 = arith.subf %51, %54 : vector<8x8xf32>
    %56 = math.exp %55 : vector<8x8xf32>
    %cst_15 = arith.constant dense<0.000000e+00> : vector<8xf32>
    %57 = vector.multi_reduction <add>, %56, %cst_15 [1] : vector<8x8xf32> to vector<8xf32>
    %58 = vector.shape_cast %57 : vector<8xf32> to vector<8x1xf32>
    %59 = tpu.reciprocal %58 {approx = true} : vector<8x1xf32> -> vector<8x1xf32>
    %60 = vector.broadcast %59 : vector<8x1xf32> to vector<8x8xf32>
    %61 = arith.mulf %56, %60 : vector<8x8xf32>
    %62 = arith.truncf %61 : vector<8x8xf32> to vector<8x8xbf16>
    %cst_16 = arith.constant dense<0.000000e+00> : vector<8x8xf32>
    %63 = tpu.matmul %62, %50, %cst_16 {dimension_numbers = #tpu.dot_dimension_numbers<[1], [0], [0], [1], [0, 0, 1, 1], [], []>} : vector<8x8xbf16>, vector<8x8xbf16>, vector<8x8xf32> -> vector<8x8xf32>
    %64 = arith.truncf %63 : vector<8x8xf32> to vector<8x8xbf16>
    %65 = vector.extract_strided_slice %9 {offsets = [0, 24], sizes = [8, 8], strides = [1, 1]} : vector<16x32xbf16> to vector<8x8xbf16>
    %66 = vector.extract_strided_slice %11 {offsets = [0, 24], sizes = [8, 8], strides = [1, 1]} : vector<16x32xbf16> to vector<8x8xbf16>
    %67 = vector.extract_strided_slice %13 {offsets = [0, 24], sizes = [8, 8], strides = [1, 1]} : vector<16x32xbf16> to vector<8x8xbf16>
    %cst_17 = arith.constant dense<0.000000e+00> : vector<8x8xf32>
    %68 = tpu.matmul %65, %66, %cst_17 {dimension_numbers = #tpu.dot_dimension_numbers<[1], [1], [0], [0], [0, 0, 1, 0], [], []>} : vector<8x8xbf16>, vector<8x8xbf16>, vector<8x8xf32> -> vector<8x8xf32>
    %cst_18 = arith.constant dense<0xFF800000> : vector<8xf32>
    %69 = vector.multi_reduction <maximumf>, %68, %cst_18 [1] : vector<8x8xf32> to vector<8xf32>
    %70 = vector.shape_cast %69 : vector<8xf32> to vector<8x1xf32>
    %71 = vector.broadcast %70 : vector<8x1xf32> to vector<8x8xf32>
    %72 = arith.subf %68, %71 : vector<8x8xf32>
    %73 = math.exp %72 : vector<8x8xf32>
    %cst_19 = arith.constant dense<0.000000e+00> : vector<8xf32>
    %74 = vector.multi_reduction <add>, %73, %cst_19 [1] : vector<8x8xf32> to vector<8xf32>
    %75 = vector.shape_cast %74 : vector<8xf32> to vector<8x1xf32>
    %76 = tpu.reciprocal %75 {approx = true} : vector<8x1xf32> -> vector<8x1xf32>
    %77 = vector.broadcast %76 : vector<8x1xf32> to vector<8x8xf32>
    %78 = arith.mulf %73, %77 : vector<8x8xf32>
    %79 = arith.truncf %78 : vector<8x8xf32> to vector<8x8xbf16>
    %cst_20 = arith.constant dense<0.000000e+00> : vector<8x8xf32>
    %80 = tpu.matmul %79, %67, %cst_20 {dimension_numbers = #tpu.dot_dimension_numbers<[1], [0], [0], [1], [0, 0, 1, 1], [], []>} : vector<8x8xbf16>, vector<8x8xbf16>, vector<8x8xf32> -> vector<8x8xf32>
    %81 = arith.truncf %80 : vector<8x8xf32> to vector<8x8xbf16>
    %82 = tpu.concatenate %30, %47, %64, %81 in 1 : vector<8x8xbf16>, vector<8x8xbf16>, vector<8x8xbf16>, vector<8x8xbf16> -> vector<8x32xbf16>
    %83 = vector.extract_strided_slice %9 {offsets = [8, 0], sizes = [8, 8], strides = [1, 1]} : vector<16x32xbf16> to vector<8x8xbf16>
    %84 = vector.extract_strided_slice %11 {offsets = [8, 0], sizes = [8, 8], strides = [1, 1]} : vector<16x32xbf16> to vector<8x8xbf16>
    %85 = vector.extract_strided_slice %13 {offsets = [8, 0], sizes = [8, 8], strides = [1, 1]} : vector<16x32xbf16> to vector<8x8xbf16>
    %cst_21 = arith.constant dense<0.000000e+00> : vector<8x8xf32>
    %86 = tpu.matmul %83, %84, %cst_21 {dimension_numbers = #tpu.dot_dimension_numbers<[1], [1], [0], [0], [0, 0, 1, 0], [], []>} : vector<8x8xbf16>, vector<8x8xbf16>, vector<8x8xf32> -> vector<8x8xf32>
    %cst_22 = arith.constant dense<0xFF800000> : vector<8xf32>
    %87 = vector.multi_reduction <maximumf>, %86, %cst_22 [1] : vector<8x8xf32> to vector<8xf32>
    %88 = vector.shape_cast %87 : vector<8xf32> to vector<8x1xf32>
    %89 = vector.broadcast %88 : vector<8x1xf32> to vector<8x8xf32>
    %90 = arith.subf %86, %89 : vector<8x8xf32>
    %91 = math.exp %90 : vector<8x8xf32>
    %cst_23 = arith.constant dense<0.000000e+00> : vector<8xf32>
    %92 = vector.multi_reduction <add>, %91, %cst_23 [1] : vector<8x8xf32> to vector<8xf32>
    %93 = vector.shape_cast %92 : vector<8xf32> to vector<8x1xf32>
    %94 = tpu.reciprocal %93 {approx = true} : vector<8x1xf32> -> vector<8x1xf32>
    %95 = vector.broadcast %94 : vector<8x1xf32> to vector<8x8xf32>
    %96 = arith.mulf %91, %95 : vector<8x8xf32>
    %97 = arith.truncf %96 : vector<8x8xf32> to vector<8x8xbf16>
    %cst_24 = arith.constant dense<0.000000e+00> : vector<8x8xf32>
    %98 = tpu.matmul %97, %85, %cst_24 {dimension_numbers = #tpu.dot_dimension_numbers<[1], [0], [0], [1], [0, 0, 1, 1], [], []>} : vector<8x8xbf16>, vector<8x8xbf16>, vector<8x8xf32> -> vector<8x8xf32>
    %99 = arith.truncf %98 : vector<8x8xf32> to vector<8x8xbf16>
    %100 = vector.extract_strided_slice %9 {offsets = [8, 8], sizes = [8, 8], strides = [1, 1]} : vector<16x32xbf16> to vector<8x8xbf16>
    %101 = vector.extract_strided_slice %11 {offsets = [8, 8], sizes = [8, 8], strides = [1, 1]} : vector<16x32xbf16> to vector<8x8xbf16>
    %102 = vector.extract_strided_slice %13 {offsets = [8, 8], sizes = [8, 8], strides = [1, 1]} : vector<16x32xbf16> to vector<8x8xbf16>
    %cst_25 = arith.constant dense<0.000000e+00> : vector<8x8xf32>
    %103 = tpu.matmul %100, %101, %cst_25 {dimension_numbers = #tpu.dot_dimension_numbers<[1], [1], [0], [0], [0, 0, 1, 0], [], []>} : vector<8x8xbf16>, vector<8x8xbf16>, vector<8x8xf32> -> vector<8x8xf32>
    %cst_26 = arith.constant dense<0xFF800000> : vector<8xf32>
    %104 = vector.multi_reduction <maximumf>, %103, %cst_26 [1] : vector<8x8xf32> to vector<8xf32>
    %105 = vector.shape_cast %104 : vector<8xf32> to vector<8x1xf32>
    %106 = vector.broadcast %105 : vector<8x1xf32> to vector<8x8xf32>
    %107 = arith.subf %103, %106 : vector<8x8xf32>
    %108 = math.exp %107 : vector<8x8xf32>
    %cst_27 = arith.constant dense<0.000000e+00> : vector<8xf32>
    %109 = vector.multi_reduction <add>, %108, %cst_27 [1] : vector<8x8xf32> to vector<8xf32>
    %110 = vector.shape_cast %109 : vector<8xf32> to vector<8x1xf32>
    %111 = tpu.reciprocal %110 {approx = true} : vector<8x1xf32> -> vector<8x1xf32>
    %112 = vector.broadcast %111 : vector<8x1xf32> to vector<8x8xf32>
    %113 = arith.mulf %108, %112 : vector<8x8xf32>
    %114 = arith.truncf %113 : vector<8x8xf32> to vector<8x8xbf16>
    %cst_28 = arith.constant dense<0.000000e+00> : vector<8x8xf32>
    %115 = tpu.matmul %114, %102, %cst_28 {dimension_numbers = #tpu.dot_dimension_numbers<[1], [0], [0], [1], [0, 0, 1, 1], [], []>} : vector<8x8xbf16>, vector<8x8xbf16>, vector<8x8xf32> -> vector<8x8xf32>
    %116 = arith.truncf %115 : vector<8x8xf32> to vector<8x8xbf16>
    %117 = vector.extract_strided_slice %9 {offsets = [8, 16], sizes = [8, 8], strides = [1, 1]} : vector<16x32xbf16> to vector<8x8xbf16>
    %118 = vector.extract_strided_slice %11 {offsets = [8, 16], sizes = [8, 8], strides = [1, 1]} : vector<16x32xbf16> to vector<8x8xbf16>
    %119 = vector.extract_strided_slice %13 {offsets = [8, 16], sizes = [8, 8], strides = [1, 1]} : vector<16x32xbf16> to vector<8x8xbf16>
    %cst_29 = arith.constant dense<0.000000e+00> : vector<8x8xf32>
    %120 = tpu.matmul %117, %118, %cst_29 {dimension_numbers = #tpu.dot_dimension_numbers<[1], [1], [0], [0], [0, 0, 1, 0], [], []>} : vector<8x8xbf16>, vector<8x8xbf16>, vector<8x8xf32> -> vector<8x8xf32>
    %cst_30 = arith.constant dense<0xFF800000> : vector<8xf32>
    %121 = vector.multi_reduction <maximumf>, %120, %cst_30 [1] : vector<8x8xf32> to vector<8xf32>
    %122 = vector.shape_cast %121 : vector<8xf32> to vector<8x1xf32>
    %123 = vector.broadcast %122 : vector<8x1xf32> to vector<8x8xf32>
    %124 = arith.subf %120, %123 : vector<8x8xf32>
    %125 = math.exp %124 : vector<8x8xf32>
    %cst_31 = arith.constant dense<0.000000e+00> : vector<8xf32>
    %126 = vector.multi_reduction <add>, %125, %cst_31 [1] : vector<8x8xf32> to vector<8xf32>
    %127 = vector.shape_cast %126 : vector<8xf32> to vector<8x1xf32>
    %128 = tpu.reciprocal %127 {approx = true} : vector<8x1xf32> -> vector<8x1xf32>
    %129 = vector.broadcast %128 : vector<8x1xf32> to vector<8x8xf32>
    %130 = arith.mulf %125, %129 : vector<8x8xf32>
    %131 = arith.truncf %130 : vector<8x8xf32> to vector<8x8xbf16>
    %cst_32 = arith.constant dense<0.000000e+00> : vector<8x8xf32>
    %132 = tpu.matmul %131, %119, %cst_32 {dimension_numbers = #tpu.dot_dimension_numbers<[1], [0], [0], [1], [0, 0, 1, 1], [], []>} : vector<8x8xbf16>, vector<8x8xbf16>, vector<8x8xf32> -> vector<8x8xf32>
    %133 = arith.truncf %132 : vector<8x8xf32> to vector<8x8xbf16>
    %134 = vector.extract_strided_slice %9 {offsets = [8, 24], sizes = [8, 8], strides = [1, 1]} : vector<16x32xbf16> to vector<8x8xbf16>
    %135 = vector.extract_strided_slice %11 {offsets = [8, 24], sizes = [8, 8], strides = [1, 1]} : vector<16x32xbf16> to vector<8x8xbf16>
    %136 = vector.extract_strided_slice %13 {offsets = [8, 24], sizes = [8, 8], strides = [1, 1]} : vector<16x32xbf16> to vector<8x8xbf16>
    %cst_33 = arith.constant dense<0.000000e+00> : vector<8x8xf32>
    %137 = tpu.matmul %134, %135, %cst_33 {dimension_numbers = #tpu.dot_dimension_numbers<[1], [1], [0], [0], [0, 0, 1, 0], [], []>} : vector<8x8xbf16>, vector<8x8xbf16>, vector<8x8xf32> -> vector<8x8xf32>
    %cst_34 = arith.constant dense<0xFF800000> : vector<8xf32>
    %138 = vector.multi_reduction <maximumf>, %137, %cst_34 [1] : vector<8x8xf32> to vector<8xf32>
    %139 = vector.shape_cast %138 : vector<8xf32> to vector<8x1xf32>
    %140 = vector.broadcast %139 : vector<8x1xf32> to vector<8x8xf32>
    %141 = arith.subf %137, %140 : vector<8x8xf32>
    %142 = math.exp %141 : vector<8x8xf32>
    %cst_35 = arith.constant dense<0.000000e+00> : vector<8xf32>
    %143 = vector.multi_reduction <add>, %142, %cst_35 [1] : vector<8x8xf32> to vector<8xf32>
    %144 = vector.shape_cast %143 : vector<8xf32> to vector<8x1xf32>
    %145 = tpu.reciprocal %144 {approx = true} : vector<8x1xf32> -> vector<8x1xf32>
    %146 = vector.broadcast %145 : vector<8x1xf32> to vector<8x8xf32>
    %147 = arith.mulf %142, %146 : vector<8x8xf32>
    %148 = arith.truncf %147 : vector<8x8xf32> to vector<8x8xbf16>
    %cst_36 = arith.constant dense<0.000000e+00> : vector<8x8xf32>
    %149 = tpu.matmul %148, %136, %cst_36 {dimension_numbers = #tpu.dot_dimension_numbers<[1], [0], [0], [1], [0, 0, 1, 1], [], []>} : vector<8x8xbf16>, vector<8x8xbf16>, vector<8x8xf32> -> vector<8x8xf32>
    %150 = arith.truncf %149 : vector<8x8xf32> to vector<8x8xbf16>
    %151 = tpu.concatenate %99, %116, %133, %150 in 1 : vector<8x8xbf16>, vector<8x8xbf16>, vector<8x8xbf16>, vector<8x8xbf16> -> vector<8x32xbf16>
    %152 = tpu.concatenate %82, %151 in 0 : vector<8x32xbf16>, vector<8x32xbf16> -> vector<16x32xbf16>
    %c0_37 = arith.constant 0 : index
    %c0_38 = arith.constant 0 : index
    %153 = vector.load %arg4[%c0_37, %c0_38] : memref<32x32xbf16, #tpu.memory_space<vmem>>, vector<32x32xbf16>
    %cst_39 = arith.constant dense<0.000000e+00> : vector<16x32xf32>
    %154 = tpu.matmul %152, %153, %cst_39 {dimension_numbers = #tpu.dot_dimension_numbers<[1], [0], [0], [1], [0, 0, 1, 1], [], []>} : vector<16x32xbf16>, vector<32x32xbf16>, vector<16x32xf32> -> vector<16x32xf32>
    %c0_40 = arith.constant 0 : index
    %c0_41 = arith.constant 0 : index
    %155 = vector.load %arg5[%c0_40, %c0_41] : memref<1x32xf32, #tpu.memory_space<vmem>>, vector<1x32xf32>
    %156 = vector.shape_cast %155 : vector<1x32xf32> to vector<32xf32>
    %157 = vector.shape_cast %156 : vector<32xf32> to vector<1x32xf32>
    %158 = vector.broadcast %157 : vector<1x32xf32> to vector<16x32xf32>
    %159 = arith.addf %154, %158 : vector<16x32xf32>
    %c0_42 = arith.constant 0 : index
    %c0_43 = arith.constant 0 : index
    %160 = vector.load %arg6[%c0_42, %c0_43] : memref<16x32xf32, #tpu.memory_space<vmem>>, vector<16x32xf32>
    tpu.vector_store %arg6[%c0_42, %c0_43], %159 {strides = array<i32>} : memref<16x32xf32, #tpu.memory_space<vmem>>, vector<16x32xf32>,
    return
  }
  func.func @transform_0(%arg0: i32) -> (i32, i32) {
    %c0_i32 = arith.constant 0 : i32
    %c0_i32_0 = arith.constant 0 : i32
    %c0_i32_1 = arith.constant 0 : i32
    return %c0_i32, %c0_i32_0 : i32, i32
  }
  func.func @transform_1(%arg0: i32) -> (i32, i32) {
    %c0_i32 = arith.constant 0 : i32
    %c0_i32_0 = arith.constant 0 : i32
    %c0_i32_1 = arith.constant 0 : i32
    return %c0_i32, %c0_i32_0 : i32, i32
  }
  func.func @transform_2(%arg0: i32) -> (i32, i32) {
    %c0_i32 = arith.constant 0 : i32
    %c0_i32_0 = arith.constant 0 : i32
    %c0_i32_1 = arith.constant 0 : i32
    return %c0_i32, %c0_i32_0 : i32, i32
  }
  func.func @transform_3(%arg0: i32) -> (i32, i32) {
    %c0_i32 = arith.constant 0 : i32
    %c0_i32_0 = arith.constant 0 : i32
    %c0_i32_1 = arith.constant 0 : i32
    return %c0_i32, %c0_i32_0 : i32, i32
  }
  func.func @transform_4(%arg0: i32) -> (i32, i32) {
    %c0_i32 = arith.constant 0 : i32
    %c0_i32_0 = arith.constant 0 : i32
    %c0_i32_1 = arith.constant 0 : i32
    return %c0_i32, %c0_i32_0 : i32, i32
  }
  func.func @transform_5(%arg0: i32) -> (i32, i32) {
    %c0_i32 = arith.constant 0 : i32
    %c0_i32_0 = arith.constant 0 : i32
    %c0_i32_1 = arith.constant 0 : i32
    return %c0_i32, %c0_i32_0 : i32, i32
  }
}

</mosaic_0001>

<bundles_post_ra>
// kernel: tpu_custom_call.1
= control target key start
LH: loop header
LB: loop body
LE: loop exit
PB: predicated region body
PF: predicated region fallthrough
CT: control target
= control target key end

     0   :  { %10 = vsyncpa [#allocation3], 0  ;;  %s1742_s0 = inlined_call_operand.hbm [shape: bf16[16,32], index: 0, kind: input, shape index: {}]   ;;  %s1743_s1 = inlined_call_operand.hbm [shape: bf16[32,96], index: 1, kind: input, shape index: {}]   ;;  %s1744_s2 = inlined_call_operand.vmem [shape: f32[1,96], index: 2, kind: input, shape index: {}]   ;;  %s1745_s3 = inlined_call_operand.hbm [shape: bf16[32,32], index: 3, kind: input, shape index: {}]   ;;  %s1746_s4 = inlined_call_operand.vmem [shape: f32[1,32], index: 4, kind: input, shape index: {}]   ;;  %s1747_s5 = inlined_call_operand.hbm [shape: f32[16,32], index: 5, kind: output, shape index: {}]  }
   0x1   :  { %11 = vsyncpa [#allocation6], 0 }
   0x2   :  { %12 = vsyncpa [#allocation4], 0  ;;  %s1471_s18 = smov [#allocation5]   ;;  %s1472_s20 = smov [#allocation2]  }
   0x3   :  { %s30_s19 = sshll.u32 %s1471_s18, 4  ;;  %s18_s21 = sshll.u32 %s1472_s20, 4  ;;  %s31_s19 = int_to_ptr.vmem [resolvable:$true] %s30_s19  ;;  %s19_s21 = int_to_ptr.vmem [resolvable:$true] %s18_s21 }
   0x4   :  { %s1393_s22 = scalar_lea.vmem %s31_s19, 256  ;;  %p1398_p1 = scmp.lt.s32.totalorder %s31_s19, %s31_s19 }
   0x5   :  { %p1394_p0 = scmp.ne.s32.totalorder %s31_s19, %s1393_s22  ;;  %p1399_p2 = scmp.lt.s32.totalorder %s1393_s22, %s1393_s22 }
   0x7   :  { %p1400_p3 = por %p1399_p2, %p1398_p1 }
   0x9   :  { %p1401_p4 = pnand %p1400_p3, %p1394_p0 }
   0xb   :  { %1404 = shalt.err (!%p1401_p4)
}
   0xc   :  { %s1473_s23 = smov 64   ;;  %s1474_s24 = smov 4  }
   0xd   :  { %36 = dma.hbm_to_vmem [thread:$0]  %s1743_s1, 256, %s31_s19, [#allocation6], %s1473_s23, %s1473_s23, %s1474_s24  }
   0xe   :  { %s1413_s27 = scalar_lea.vmem %s19_s21, 128  ;;  %p1418_p6 = scmp.lt.s32.totalorder %s19_s21, %s19_s21 }
   0xf   :  { %p1414_p5 = scmp.ne.s32.totalorder %s19_s21, %s1413_s27  ;;  %p1419_p7 = scmp.lt.s32.totalorder %s1413_s27, %s1413_s27 }
  0x11   :  { %p1420_p8 = por %p1419_p7, %p1418_p6 }
  0x13   :  { %p1421_p9 = pnand %p1420_p8, %p1414_p5 }
  0x15   :  { %1424 = shalt.err (!%p1421_p9)
}
  0x16   :  { %24 = dma.hbm_to_vmem [thread:$0]  %s1742_s0, 128, %s19_s21, [#allocation3], %s1473_s23, %s1473_s23, %s1474_s24  }
  0x17   :  { %s1475_s30 = smov [#allocation7]  }
  0x18   :  { %s44_s6 = sshll.u32 %s1475_s30, 4  ;;  %s45_s6 = int_to_ptr.vmem [resolvable:$true] %s44_s6 }
  0x19   :  { %s1433_s7 = scalar_lea.vmem %s45_s6, 256  ;;  %p1438_p11 = scmp.lt.s32.totalorder %s45_s6, %s45_s6 }
  0x1a   :  { %p1434_p10 = scmp.ne.s32.totalorder %s45_s6, %s1433_s7  ;;  %p1439_p12 = scmp.lt.s32.totalorder %s1433_s7, %s1433_s7 }
  0x1c   :  { %p1440_p13 = por %p1439_p12, %p1438_p11 }
  0x1e   :  { %p1441_p0 = pnand %p1440_p13, %p1434_p10 }
  0x20   :  { %1444 = shalt.err (!%p1441_p0)
}
  0x21   :  { %50 = dma.hbm_to_vmem [thread:$0]  %s1745_s3, 256, %s45_s6, [#allocation6], %s1473_s23, %s1473_s23, %s1474_s24  }
  0x22   :  { %1465 = dma.done.wait [#allocation3], 128  }
  0x23   :  { %1466 = vsyncadd [#allocation3], 4294967168 }
  0x24   :  { %1467 = dma.done.wait [#allocation6], 512  }
  0x25   :  { %1468 = vsyncadd [#allocation6], 4294966784  ;;  %v1476_v0 = vmov 0.0   ;;  %vm1477_vm0 = vmmov 0   ;;  %v1348_v1 = vld [vmem:[#allocation5 + $0x8] sm:$0xff]   ;;  %v1349_v2 = vld [vmem:[#allocation5] sm:$0xff]  }
  0x26   :  { %1214 = vmatprep.subr.bf16.mxu0 %v1476_v0  ;;  %1218 = vmatprep.mubr.msk.bf16.mxu0 %vm1477_vm0, %v1476_v0  ;;  %v1350_v3 = vld [vmem:[#allocation2] sm:$0xff]   ;;  %vm93_vm1 = vcmask 261120   ;;  %s1478_s9 = smov 120   ;;  %s1479_s10 = smov 96   ;;  %vm142_vm2 = vcmask 64512   ;;  %vm206_vm3 = vcmask 1043456  }
  0x27   :  { %1222 = vmatprep.subr.bf16.mxu1 %v1476_v0  ;;  %1224 = vmatprep.mubr.msk.bf16.mxu1 %vm1477_vm0, %v1476_v0  ;;  %v1151_v5 = vld [vmem:[%s1744_s2] ss:$0 sm:$0xff]  ;;  %s1480_s11 = smov 80   ;;  %s1481_s12 = smov 88   ;;  %vm599_vm4 = vcmask 195584   ;;  %vm596_vm5 = vcmask 130048  }
  0x28   :  { %1215 = vmatpush3.bf16.msra.mxu0 %v1348_v1  ;;  %s1482_s2 = smov 72   ;;  %s1483_s13 = smov 112  }
  0x29   :  { %1216 = vmatprep.subr.bf16.mxu0 %v1476_v0  ;;  %s1484_s14 = smov 104   ;;  %s1485_s15 = smov 56  }
  0x2a   :  { %s1486_s16 = smov 48   ;;  %s1487_s17 = smov 40  }
  0x2b   :  { %s1488_s18 = smov 8   ;;  %s1489_s19 = smov 16  }
  0x2c   :  { %1217 = vmatpush3.bf16.msra.mxu0 %v1349_v2  ;;  %s1490_s20 = smov 24  }
  0x2d   :  { %1228 = vmatprep.subr.bf16.mxu0 %v1476_v0 }
  0x2f   :  { %1219 = vmatmul.mubr.msk.bf16.vlgmr.msra.gmra.mxu0 %vm93_vm1, %v1350_v3 }
  0x30   :  { %1230 = vmatprep.mubr.msk.bf16.mxu0 %vm1477_vm0, %v1476_v0 }
  0xef   :  { %v131_v4 = vpop.f32.mrf.mxu0 }
  0xf0   :  { %v132_v8 = vadd.f32 %v1151_v5, %v131_v4 }
  0xf1   :  { %v1220_v6 = vpop.f32.mrf.mxu0 }
  0xf3   :  { %v134_v7 = vpop.f32.mrf.mxu0 }
  0xf4   :  { %v135_v9 = vadd.f32 %v1151_v5, %v134_v7 }
  0xf5   :  { %v1221_v10 = vpop.f32.mrf.mxu0 }
  0xf6   :  { %v1552_v11 = vpack.c.bf16 %v135_v9, %v132_v8 }
  0xf8   :  { %251 = vrot.lane.b32.xlu1 %v1552_v11, %s1478_s9  ;;  %140 = vrot.lane.b32.xlu0 %v1552_v11, %s1479_s10  ;;  %v1561_v12 = vrot.slane %v1552_v11, 4 }
  0xfc   :  { %364 = vrot.lane.b32.xlu1 %v1552_v11, %s1480_s11  ;;  %253 = vrot.lane.b32.xlu0 %v1552_v11, %s1481_s12 }
 0x100   :  { %475 = vrot.lane.b32.xlu1 %v1552_v11, %s1482_s2  ;;  %362 = vrot.lane.b32.xlu0 %v1552_v11, %s1483_s13 }
 0x104   :  { %473 = vrot.lane.b32.xlu0 %v1552_v11, %s1484_s14  ;;  %603 = vrot.lane.b32.xlu1 %v1561_v12, %s1479_s10 }
 0x108   :  { %714 = vrot.lane.b32.xlu0 %v1561_v12, %s1481_s12  ;;  %712 = vrot.lane.b32.xlu1 %v1561_v12, %s1478_s9 }
 0x10c   :  { %825 = vrot.lane.b32.xlu0 %v1561_v12, %s1480_s11  ;;  %823 = vrot.lane.b32.xlu1 %v1561_v12, %s1483_s13 }
 0x110   :  { %936 = vrot.lane.b32.xlu0 %v1561_v12, %s1482_s2  ;;  %934 = vrot.lane.b32.xlu1 %v1561_v12, %s1484_s14 }
 0x16a   :  { %v141_v13 = vpop.permute.xlu0 %140  ;;  %v252_v16 = vpop.permute.xlu1 %251 }
 0x16b   :  { %v147_v14 = vsel %vm142_vm2, %v141_v13, 0 }
 0x16c   :  { %1223 = vmatpush3.bf16.xpose.msra.mxu1 %v147_v14 }
 0x16d   :  { %1234 = vmatprep.subr.bf16.mxu1 %v1476_v0 }
 0x16e   :  { %v254_v15 = vpop.permute.xlu0 %253  ;;  %v365_v18 = vpop.permute.xlu1 %364 }
 0x16f   :  { %v259_v17 = vsel %vm142_vm2, %v254_v15, 0  ;;  %v370_v19 = vsel %vm142_vm2, %v365_v18, 0 }
 0x172   :  { %v476_v20 = vpop.permute.xlu1 %475  ;;  %v363_v21 = vpop.permute.xlu0 %362 }
 0x173   :  { %1225 = vmatmul.mubr.msk.bf16.vlgmr.msra.gmra.mxu1 %vm142_vm2, %v1552_v11  ;;  %v481_v22 = vsel %vm142_vm2, %v476_v20, 0 }
 0x174   :  { %1235 = vmatpush3.bf16.xpose.msra.mxu1 %v259_v17  ;;  %1236 = vmatprep.mubr.msk.bf16.mxu1 %vm1477_vm0, %v1476_v0 }
 0x175   :  { %1246 = vmatprep.subr.bf16.mxu1 %v1476_v0 }
 0x176   :  { %v604_v23 = vpop.permute.xlu1 %603  ;;  %v474_v24 = vpop.permute.xlu0 %473 }
 0x177   :  { %v609_v25 = vsel %vm142_vm2, %v604_v23, 0 }
 0x17a   :  { %v715_v26 = vpop.permute.xlu0 %714  ;;  %v713_v29 = vpop.permute.xlu1 %712 }
 0x17b   :  { %1237 = vmatmul.mubr.msk.bf16.vlgmr.msra.gmra.mxu1 %vm142_vm2, %v252_v16  ;;  %v720_v27 = vsel %vm142_vm2, %v715_v26, 0 }
 0x17c   :  { %1247 = vmatpush3.bf16.xpose.msra.mxu1 %v370_v19  ;;  %1248 = vmatprep.mubr.msk.bf16.mxu1 %vm1477_vm0, %v1476_v0 }
 0x17d   :  { %1258 = vmatprep.subr.bf16.mxu1 %v1476_v0 }
 0x17e   :  { %v826_v28 = vpop.permute.xlu0 %825  ;;  %v824_v32 = vpop.permute.xlu1 %823 }
 0x17f   :  { %v831_v30 = vsel %vm142_vm2, %v826_v28, 0 }
 0x182   :  { %v937_v31 = vpop.permute.xlu0 %936  ;;  %v935_v34 = vpop.permute.xlu1 %934 }
 0x183   :  { %1249 = vmatmul.mubr.msk.bf16.vlgmr.msra.gmra.mxu1 %vm142_vm2, %v363_v21  ;;  %v942_v33 = vsel %vm142_vm2, %v937_v31, 0 }
 0x184   :  { %1259 = vmatpush3.bf16.xpose.msra.mxu1 %v481_v22  ;;  %1260 = vmatprep.mubr.msk.bf16.mxu1 %vm1477_vm0, %v1476_v0 }
 0x185   :  { %1270 = vmatprep.subr.bf16.mxu1 %v1476_v0 }
 0x18b   :  { %1261 = vmatmul.mubr.msk.bf16.vlgmr.msra.gmra.mxu1 %vm142_vm2, %v474_v24 }
 0x18c   :  { %1271 = vmatpush3.bf16.xpose.msra.mxu1 %v609_v25  ;;  %1272 = vmatprep.mubr.msk.bf16.mxu1 %vm1477_vm0, %v1476_v0 }
 0x18d   :  { %1282 = vmatprep.subr.bf16.mxu1 %v1476_v0 }
 0x193   :  { %1273 = vmatmul.mubr.msk.bf16.vlgmr.msra.gmra.mxu1 %vm142_vm2, %v1561_v12 }
 0x194   :  { %1283 = vmatpush3.bf16.xpose.msra.mxu1 %v720_v27  ;;  %1284 = vmatprep.mubr.msk.bf16.mxu1 %vm1477_vm0, %v1476_v0 }
 0x195   :  { %1294 = vmatprep.subr.bf16.mxu1 %v1476_v0 }
 0x19b   :  { %1285 = vmatmul.mubr.msk.bf16.vlgmr.msra.gmra.mxu1 %vm142_vm2, %v713_v29 }
 0x19c   :  { %1295 = vmatpush3.bf16.xpose.msra.mxu1 %v831_v30  ;;  %1296 = vmatprep.mubr.msk.bf16.mxu1 %vm1477_vm0, %v1476_v0 }
 0x19d   :  { %1306 = vmatprep.subr.bf16.mxu1 %v1476_v0 }
 0x1a3   :  { %1297 = vmatmul.mubr.msk.bf16.vlgmr.msra.gmra.mxu1 %vm142_vm2, %v824_v32 }
 0x1a4   :  { %1307 = vmatpush3.bf16.xpose.msra.mxu1 %v942_v33  ;;  %1308 = vmatprep.mubr.msk.bf16.mxu1 %vm1477_vm0, %v1476_v0 }
 0x1a5   :  { %1318 = vmatprep.subr.bf16.mxu1 %v1476_v0 }
 0x1ab   :  { %1309 = vmatmul.mubr.msk.bf16.vlgmr.msra.gmra.mxu1 %vm142_vm2, %v935_v34 }
 0x1ac   :  { %1322 = vmatprep.mubr.msk.bf16.mxu1 %vm1477_vm0, %v1476_v0 }
 0x233   :  { %v183_v35 = vpop.f32.mrf.mxu1 }
 0x234   :  { %v189_v36 = vsel %vm142_vm2, %v183_v35, -inf }
 0x235   :  { %v1226_v37 = vpop.f32.mrf.mxu1  ;;  %190 = vmax.xlane.f32.xlu0 %v189_v36 }
 0x237   :  { %v186_v38 = vpop.f32.mrf.mxu1 }
 0x239   :  { %v1227_v39 = vpop.f32.mrf.mxu1 }
 0x23b   :  { %v295_v40 = vpop.f32.mrf.mxu1 }
 0x23c   :  { %v301_v41 = vsel %vm142_vm2, %v295_v40, -inf }
 0x23d   :  { %v1238_v42 = vpop.f32.mrf.mxu1  ;;  %302 = vmax.xlane.f32.xlu1 %v301_v41 }
 0x23f   :  { %v298_v43 = vpop.f32.mrf.mxu1 }
 0x241   :  { %v1239_v44 = vpop.f32.mrf.mxu1 }
 0x243   :  { %v406_v45 = vpop.f32.mrf.mxu1 }
 0x244   :  { %v412_v46 = vsel %vm142_vm2, %v406_v45, -inf }
 0x245   :  { %v1250_v47 = vpop.f32.mrf.mxu1  ;;  %413 = vmax.xlane.f32.xlu0 %v412_v46 }
 0x247   :  { %v409_v48 = vpop.f32.mrf.mxu1 }
 0x249   :  { %v1251_v49 = vpop.f32.mrf.mxu1 }
 0x24b   :  { %v1616_v50 = vpop.f32.mrf.mxu1 }
 0x24c   :  { %v523_v51 = vsel %vm142_vm2, %v1616_v50, -inf }
 0x24d   :  { %v1262_v52 = vpop.f32.mrf.mxu1  ;;  %524 = vmax.xlane.f32.xlu0 %v523_v51 }
 0x24f   :  { %v520_v53 = vpop.f32.mrf.mxu1 }
 0x251   :  { %v1263_v54 = vpop.f32.mrf.mxu1 }
 0x253   :  { %v1620_v55 = vpop.f32.mrf.mxu1 }
 0x254   :  { %v651_v56 = vsel %vm142_vm2, %v1620_v55, -inf }
 0x255   :  { %652 = vmax.xlane.f32.xlu1 %v651_v56  ;;  %v1274_v57 = vpop.f32.mrf.mxu1 }
 0x257   :  { %v648_v58 = vpop.f32.mrf.mxu1 }
 0x259   :  { %v1275_v59 = vpop.f32.mrf.mxu1 }
 0x25b   :  { %v756_v60 = vpop.f32.mrf.mxu1 }
 0x25c   :  { %v762_v61 = vsel %vm142_vm2, %v756_v60, -inf }
 0x25d   :  { %763 = vmax.xlane.f32.xlu0 %v762_v61  ;;  %v1286_v62 = vpop.f32.mrf.mxu1 }
 0x25f   :  { %v759_v63 = vpop.f32.mrf.mxu1 }
 0x261   :  { %v1287_v1 = vpop.f32.mrf.mxu1 }
 0x263   :  { %v867_v2 = vpop.f32.mrf.mxu1 }
 0x264   :  { %v873_v3 = vsel %vm142_vm2, %v867_v2, -inf }
 0x265   :  { %874 = vmax.xlane.f32.xlu1 %v873_v3  ;;  %v1298_v4 = vpop.f32.mrf.mxu1 }
 0x267   :  { %v870_v5 = vpop.f32.mrf.mxu1 }
 0x269   :  { %v1299_v6 = vpop.f32.mrf.mxu1 }
 0x26b   :  { %v1626_v7 = vpop.f32.mrf.mxu1 }
 0x26c   :  { %v984_v13 = vsel %vm142_vm2, %v1626_v7, -inf }
 0x26d   :  { %v1310_v8 = vpop.f32.mrf.mxu1 }
 0x26f   :  { %v981_v9 = vpop.f32.mrf.mxu1 }
 0x271   :  { %v1311_v10 = vpop.f32.mrf.mxu1 }
 0x273   :  { %313 = vrot.lane.b32.xlu0 %v1552_v11, %s1485_s15 }
 0x276   :  { %201 = vrot.lane.b32.xlu1 %v1552_v11, %s1473_s23 }
 0x292   :  { %985 = vmax.xlane.f32.xlu0 %v984_v13 }
 0x2be   :  { %v191_v14 = vpop.xlane.xlu0 %190 }
 0x2bf   :  { %v192_v15 = vsub.f32 %v183_v35, %v191_v14 }
 0x2c1   :  { %v193_v16 = vmul.f32 1.442695, %v192_v15 }
 0x2c3   :  { %1353 = vpow2.f32 %v193_v16 }
 0x2c6   :  { %v303_v17 = vpop.xlane.xlu1 %302 }
 0x2c7   :  { %v304_v18 = vsub.f32 %v295_v40, %v303_v17 }
 0x2c9   :  { %v305_v19 = vmul.f32 1.442695, %v304_v18 }
 0x2cb   :  { %1355 = vpow2.f32 %v305_v19 }
 0x2ce   :  { %v414_v20 = vpop.xlane.xlu0 %413 }
 0x2cf   :  { %v415_v21 = vsub.f32 %v406_v45, %v414_v20 }
 0x2d0   :  { %v1634_v22 = vpop.eup %1353 }
 0x2d1   :  { %v416_v23 = vmul.f32 1.442695, %v415_v21  ;;  %v195_v24 = vsel %vm142_vm2, %v1634_v22, 0.0 }
 0x2d2   :  { %196 = vadd.xlane.f32.xlu1 %v195_v24 }
 0x2d3   :  { %1357 = vpow2.f32 %v416_v23 }
 0x2d6   :  { %v525_v32 = vpop.xlane.xlu0 %524 }
 0x2d7   :  { %v526_v34 = vsub.f32 %v1616_v50, %v525_v32 }
 0x2d8   :  { %v1638_v25 = vpop.eup %1355 }
 0x2d9   :  { %v307_v26 = vsel %vm142_vm2, %v1638_v25, 0.0  ;;  %v527_v35 = vmul.f32 1.442695, %v526_v34 }
 0x2da   :  { %308 = vadd.xlane.f32.xlu0 %v307_v26 }
 0x2db   :  { %1359 = vpow2.f32 %v527_v35 }
 0x2de   :  { %v653_v29 = vpop.xlane.xlu1 %652 }
 0x2df   :  { %v654_v36 = vsub.f32 %v1620_v55, %v653_v29 }
 0x2e0   :  { %v1642_v27 = vpop.eup %1357 }
 0x2e1   :  { %v418_v28 = vsel %vm142_vm2, %v1642_v27, 0.0  ;;  %v655_v39 = vmul.f32 1.442695, %v654_v36 }
 0x2e2   :  { %419 = vadd.xlane.f32.xlu1 %v418_v28 }
 0x2e3   :  { %1361 = vpow2.f32 %v655_v39 }
 0x2e6   :  { %v764_v37 = vpop.xlane.xlu0 %763 }
 0x2e7   :  { %v765_v38 = vsub.f32 %v756_v60, %v764_v37 }
 0x2e8   :  { %v1360_v43 = vpop.eup %1359 }
 0x2e9   :  { %v766_v41 = vmul.f32 1.442695, %v765_v38 }
 0x2ea   :  { %v314_v50 = vpop.permute.xlu0 %313 }
 0x2eb   :  { %1363 = vpow2.f32 %v766_v41  ;;  %v319_v62 = vsel %vm206_vm3, %v314_v50, 0 }
 0x2ee   :  { %v875_v30 = vpop.xlane.xlu1 %874 }
 0x2ef   :  { %v876_v40 = vsub.f32 %v867_v2, %v875_v30 }
 0x2f0   :  { %424 = vrot.lane.b32.xlu0 %v1552_v11, %s1486_s16  ;;  %v1655_v44 = vpop.eup %1361 }
 0x2f1   :  { %v877_v42 = vmul.f32 1.442695, %v876_v40  ;;  %v657_v46 = vsel %vm142_vm2, %v1655_v44, 0.0 }
 0x2f2   :  { %v202_v31 = vpop.permute.xlu1 %201 }
 0x2f3   :  { %v208_v33 = vsel %vm206_vm3, %v202_v31, 0  ;;  %535 = vrot.lane.b32.xlu1 %v1552_v11, %s1487_s17  ;;  %1365 = vpow2.f32 %v877_v42  ;;  %v529_v11 = vsel %vm142_vm2, %v1360_v43, 0.0 }
 0x2f4   :  { %1229 = vmatpush3.bf16.msra.mxu0 %v208_v33 }
 0x2f5   :  { %1240 = vmatprep.subr.bf16.mxu0 %v1476_v0 }
 0x2f8   :  { %v1657_v45 = vpop.eup %1363 }
 0x2f9   :  { %v768_v48 = vsel %vm142_vm2, %v1657_v45, 0.0 }
 0x300   :  { %v1661_v47 = vpop.eup %1365 }
 0x301   :  { %v879_v49 = vsel %vm142_vm2, %v1661_v47, 0.0 }
 0x30f   :  { %530 = vadd.xlane.f32.xlu0 %v529_v11 }
 0x313   :  { %658 = vadd.xlane.f32.xlu0 %v657_v46 }
 0x317   :  { %769 = vadd.xlane.f32.xlu1 %v768_v48  ;;  %880 = vadd.xlane.f32.xlu0 %v879_v49 }
 0x31b   :  { %v986_v51 = vpop.xlane.xlu0 %985 }
 0x31c   :  { %v987_v52 = vsub.f32 %v1626_v7, %v986_v51 }
 0x31e   :  { %v988_v53 = vmul.f32 1.442695, %v987_v52 }
 0x320   :  { %1367 = vpow2.f32 %v988_v53 }
 0x328   :  { %774 = vrot.lane.b32.xlu1 %v1561_v12, %s1485_s15 }
 0x32c   :  { %885 = vrot.lane.b32.xlu1 %v1561_v12, %s1486_s16 }
 0x32d   :  { %v1672_v54 = vpop.eup %1367 }
 0x32e   :  { %v990_v55 = vsel %vm142_vm2, %v1672_v54, 0.0 }
 0x32f   :  { %991 = vadd.xlane.f32.xlu0 %v990_v55 }
 0x330   :  { %996 = vrot.lane.b32.xlu1 %v1561_v12, %s1487_s17 }
 0x345   :  { %663 = vrot.lane.b32.xlu0 %v1561_v12, %s1473_s23  ;;  %s1491_s23 = smov [#allocation8]  }
 0x346   :  { %s1138_s24 = sshll.u32 %s1491_s23, 4  ;;  %s1139_s24 = int_to_ptr.vmem [resolvable:$true] %s1138_s24 }
 0x347   :  { %s1445_s25 = scalar_lea.vmem %s1139_s24, 256  ;;  %p1450_p2 = scmp.lt.s32.totalorder %s1139_s24, %s1139_s24 }
 0x348   :  { %p1446_p1 = scmp.ne.s32.totalorder %s1139_s24, %s1445_s25  ;;  %p1451_p3 = scmp.lt.s32.totalorder %s1445_s25, %s1445_s25 }
 0x34a   :  { %p1452_p4 = por %p1451_p3, %p1450_p2 }
 0x34c   :  { %p1453_p5 = pnand %p1452_p4, %p1446_p1 }
 0x35b   :  { %v197_v56 = vpop.xlane.xlu1 %196 }
 0x35c   :  { %1369 = vrcp.f32 %v197_v56 }
 0x363   :  { %v309_v57 = vpop.xlane.xlu0 %308 }
 0x364   :  { %1371 = vrcp.f32 %v309_v57 }
 0x367   :  { %v425_v1 = vpop.permute.xlu0 %424 }
 0x368   :  { %v430_v3 = vsel %vm206_vm3, %v425_v1, 0 }
 0x369   :  { %v1370_v58 = vpop.eup %1369 }
 0x36a   :  { %v199_v59 = vmul.f32 %v1370_v58, %v1634_v22 }
 0x36b   :  { %v420_v60 = vpop.xlane.xlu1 %419 }
 0x36c   :  { %1373 = vrcp.f32 %v420_v60  ;;  %v200_v61 = vpack.c.bf16 %v199_v59, %v199_v59  ;;  %v1351_v60 = vld [vmem:[#allocation7 + $0x8] sm:$0xff]  }
 0x36d   :  { %1319 = vmatpush3.bf16.msra.mxu1 %v1351_v60 }
 0x36e   :  { %1231 = vmatmul.mubr.msk.bf16.vlgmr.msra.gmra.mxu0 %vm142_vm2, %v200_v61  ;;  %1320 = vmatprep.subr.bf16.mxu1 %v1476_v0 }
 0x36f   :  { %1241 = vmatpush3.bf16.msra.mxu0 %v319_v62  ;;  %1242 = vmatprep.mubr.msk.bf16.mxu0 %vm1477_vm0, %v1476_v0  ;;  %v536_v6 = vpop.permute.xlu1 %535 }
 0x370   :  { %1252 = vmatprep.subr.bf16.mxu0 %v1476_v0  ;;  %v541_v8 = vsel %vm206_vm3, %v536_v6, 0 }
 0x371   :  { %v1372_v12 = vpop.eup %1371 }
 0x372   :  { %v311_v63 = vmul.f32 %v1372_v12, %v1638_v25 }
 0x374   :  { %v312_v2 = vpack.c.bf16 %v311_v63, %v311_v63 }
 0x376   :  { %1243 = vmatmul.mubr.msk.bf16.vlgmr.msra.gmra.mxu0 %vm142_vm2, %v312_v2  ;;  %v1352_v2 = vld [vmem:[#allocation7] sm:$0xff]  }
 0x377   :  { %1253 = vmatpush3.bf16.msra.mxu0 %v430_v3  ;;  %1254 = vmatprep.mubr.msk.bf16.mxu0 %vm1477_vm0, %v1476_v0 }
 0x378   :  { %1264 = vmatprep.subr.bf16.mxu0 %v1476_v0  ;;  %1321 = vmatpush3.bf16.msra.mxu1 %v1352_v2 }
 0x379   :  { %v1374_v4 = vpop.eup %1373 }
 0x37a   :  { %v422_v5 = vmul.f32 %v1374_v4, %v1642_v27 }
 0x37c   :  { %v423_v7 = vpack.c.bf16 %v422_v5, %v422_v5 }
 0x37e   :  { %1255 = vmatmul.mubr.msk.bf16.vlgmr.msra.gmra.mxu0 %vm142_vm2, %v423_v7 }
 0x37f   :  { %1265 = vmatpush3.bf16.msra.mxu0 %v541_v8  ;;  %1266 = vmatprep.mubr.msk.bf16.mxu0 %vm1477_vm0, %v1476_v0 }
 0x380   :  { %1276 = vmatprep.subr.bf16.mxu0 %v1476_v0 }
 0x398   :  { %v531_v9 = vpop.xlane.xlu0 %530 }
 0x399   :  { %1375 = vrcp.f32 %v531_v9 }
 0x39c   :  { %v659_v14 = vpop.xlane.xlu0 %658 }
 0x39d   :  { %1377 = vrcp.f32 %v659_v14 }
 0x3a0   :  { %v770_v16 = vpop.xlane.xlu1 %769  ;;  %v881_v17 = vpop.xlane.xlu0 %880 }
 0x3a1   :  { %1379 = vrcp.f32 %v770_v16 }
 0x3a2   :  { %1381 = vrcp.f32 %v881_v17 }
 0x3a4   :  { %v775_v23 = vpop.permute.xlu1 %774 }
 0x3a5   :  { %v780_v26 = vsel %vm206_vm3, %v775_v23, 0 }
 0x3a6   :  { %v1376_v10 = vpop.eup %1375 }
 0x3a7   :  { %v533_v13 = vmul.f32 %v1376_v10, %v1360_v43 }
 0x3a8   :  { %v886_v28 = vpop.permute.xlu1 %885 }
 0x3a9   :  { %v534_v15 = vpack.c.bf16 %v533_v13, %v533_v13  ;;  %v891_v31 = vsel %vm206_vm3, %v886_v28, 0 }
 0x3aa   :  { %v1378_v18 = vpop.eup %1377 }
 0x3ab   :  { %1267 = vmatmul.mubr.msk.bf16.vlgmr.msra.gmra.mxu0 %vm142_vm2, %v534_v15  ;;  %v661_v20 = vmul.f32 %v1378_v18, %v1655_v44 }
 0x3ac   :  { %1278 = vmatprep.mubr.msk.bf16.mxu0 %vm1477_vm0, %v1476_v0  ;;  %v997_v33 = vpop.permute.xlu1 %996 }
 0x3ad   :  { %v662_v24 = vpack.c.bf16 %v661_v20, %v661_v20  ;;  %v1002_v36 = vsel %vm206_vm3, %v997_v33, 0 }
 0x3ae   :  { %v1380_v25 = vpop.eup %1379 }
 0x3af   :  { %v772_v27 = vmul.f32 %v1380_v25, %v1657_v45  ;;  %v1382_v30 = vpop.eup %1381 }
 0x3b0   :  { %v883_v32 = vmul.f32 %v1382_v30, %v1661_v47 }
 0x3b1   :  { %v773_v29 = vpack.c.bf16 %v772_v27, %v772_v27 }
 0x3b2   :  { %v884_v34 = vpack.c.bf16 %v883_v32, %v883_v32 }
 0x3b8   :  { %v992_v19 = vpop.xlane.xlu0 %991 }
 0x3b9   :  { %1383 = vrcp.f32 %v992_v19 }
 0x3bc   :  { %v664_v21 = vpop.permute.xlu0 %663 }
 0x3bd   :  { %v669_v22 = vsel %vm206_vm3, %v664_v21, 0 }
 0x3be   :  { %1277 = vmatpush3.bf16.msra.mxu0 %v669_v22 }
 0x3bf   :  { %1288 = vmatprep.subr.bf16.mxu0 %v1476_v0 }
 0x3c1   :  { %1279 = vmatmul.mubr.msk.bf16.vlgmr.msra.gmra.mxu0 %vm142_vm2, %v662_v24 }
 0x3c2   :  { %1289 = vmatpush3.bf16.msra.mxu0 %v780_v26  ;;  %1290 = vmatprep.mubr.msk.bf16.mxu0 %vm1477_vm0, %v1476_v0 }
 0x3c3   :  { %1300 = vmatprep.subr.bf16.mxu0 %v1476_v0 }
 0x3c6   :  { %v1384_v35 = vpop.eup %1383 }
 0x3c7   :  { %v994_v37 = vmul.f32 %v1384_v35, %v1672_v54 }
 0x3c9   :  { %1291 = vmatmul.mubr.msk.bf16.vlgmr.msra.gmra.mxu0 %vm142_vm2, %v773_v29  ;;  %v995_v38 = vpack.c.bf16 %v994_v37, %v994_v37 }
 0x3ca   :  { %1301 = vmatpush3.bf16.msra.mxu0 %v891_v31  ;;  %1302 = vmatprep.mubr.msk.bf16.mxu0 %vm1477_vm0, %v1476_v0  ;;  %v1172_v31 = vld [vmem:[%s1746_s4] ss:$0 sm:$0xff] }
 0x3cb   :  { %1312 = vmatprep.subr.bf16.mxu0 %v1476_v0 }
 0x3d1   :  { %1303 = vmatmul.mubr.msk.bf16.vlgmr.msra.gmra.mxu0 %vm142_vm2, %v884_v34 }
 0x3d2   :  { %1313 = vmatpush3.bf16.msra.mxu0 %v1002_v36  ;;  %1314 = vmatprep.mubr.msk.bf16.mxu0 %vm1477_vm0, %v1476_v0 }
 0x3d9   :  { %1315 = vmatmul.mubr.msk.bf16.vlgmr.msra.gmra.mxu0 %vm142_vm2, %v995_v38 }
 0x42e   :  { %v1722_v39 = vpop.f32.mrf.mxu0 }
 0x42f   :  { %v250_v22 = vpack.c.bf16 %v1722_v39, %v1722_v39 }
 0x430   :  { %v1232_v40 = vpop.f32.mrf.mxu0 }
 0x432   :  { %v247_v41 = vpop.f32.mrf.mxu0 }
 0x434   :  { %v1233_v42 = vpop.f32.mrf.mxu0 }
 0x436   :  { %v355_v43 = vpop.f32.mrf.mxu0 }
 0x437   :  { %v361_v11 = vpack.c.bf16 %v355_v43, %v355_v43 }
 0x438   :  { %v1244_v44 = vpop.f32.mrf.mxu0 }
 0x439   :  { %585 = vrot.lane.b32.xlu0 %v361_v11, %s1488_s18 }
 0x43a   :  { %v358_v45 = vpop.f32.mrf.mxu0 }
 0x43c   :  { %v1245_v46 = vpop.f32.mrf.mxu0 }
 0x43e   :  { %v466_v47 = vpop.f32.mrf.mxu0 }
 0x43f   :  { %v472_v48 = vpack.c.bf16 %v466_v47, %v466_v47 }
 0x440   :  { %v1256_v49 = vpop.f32.mrf.mxu0 }
 0x441   :  { %588 = vrot.lane.b32.xlu0 %v472_v48, %s1489_s19 }
 0x442   :  { %v469_v50 = vpop.f32.mrf.mxu0 }
 0x444   :  { %v1257_v51 = vpop.f32.mrf.mxu0 }
 0x46b   :  { %v577_v52 = vpop.f32.mrf.mxu0 }
 0x46c   :  { %v583_v0 = vpack.c.bf16 %v577_v52, %v577_v52 }
 0x46d   :  { %v1268_v53 = vpop.f32.mrf.mxu0 }
 0x46f   :  { %v580_v54 = vpop.f32.mrf.mxu0 }
 0x471   :  { %v1269_v55 = vpop.f32.mrf.mxu0 }
 0x481   :  { %v705_v56 = vpop.f32.mrf.mxu0 }
 0x482   :  { %v711_v17 = vpack.c.bf16 %v705_v56, %v705_v56 }
 0x483   :  { %v1280_v57 = vpop.f32.mrf.mxu0 }
 0x485   :  { %v708_v58 = vpop.f32.mrf.mxu0 }
 0x487   :  { %v1281_v59 = vpop.f32.mrf.mxu0 }
 0x489   :  { %v816_v61 = vpop.f32.mrf.mxu0 }
 0x48a   :  { %v822_v62 = vpack.c.bf16 %v816_v61, %v816_v61 }
 0x48b   :  { %v1292_v12 = vpop.f32.mrf.mxu0 }
 0x48c   :  { %1046 = vrot.lane.b32.xlu1 %v822_v62, %s1488_s18 }
 0x48d   :  { %v819_v63 = vpop.f32.mrf.mxu0 }
 0x48f   :  { %v1293_v1 = vpop.f32.mrf.mxu0 }
 0x491   :  { %v927_v3 = vpop.f32.mrf.mxu0 }
 0x492   :  { %v933_v4 = vpack.c.bf16 %v927_v3, %v927_v3 }
 0x493   :  { %v1304_v5 = vpop.f32.mrf.mxu0 }
 0x494   :  { %1049 = vrot.lane.b32.xlu1 %v933_v4, %s1489_s19 }
 0x495   :  { %v930_v6 = vpop.f32.mrf.mxu0 }
 0x497   :  { %v1305_v7 = vpop.f32.mrf.mxu0 }
 0x499   :  { %v1038_v8 = vpop.f32.mrf.mxu0 }
 0x49a   :  { %v1044_v9 = vpack.c.bf16 %v1038_v8, %v1038_v8 }
 0x49b   :  { %v1316_v10 = vpop.f32.mrf.mxu0 }
 0x49c   :  { %1052 = vrot.lane.b32.xlu1 %v1044_v9, %s1490_s20 }
 0x49d   :  { %v1041_v13 = vpop.f32.mrf.mxu0 }
 0x49f   :  { %v1317_v14 = vpop.f32.mrf.mxu0 }
 0x4a0   :  { %591 = vrot.lane.b32.xlu1 %v583_v0, %s1490_s20 }
 0x4ab   :  { %v586_v18 = vpop.permute.xlu0 %585 }
 0x4ac   :  { %v595_v25 = vsel %vm142_vm2, %v250_v22, %v586_v18 }
 0x4b3   :  { %v589_v23 = vpop.permute.xlu0 %588 }
 0x4b4   :  { %v598_v26 = vsel %vm596_vm5, %v595_v25, %v589_v23 }
 0x4fe   :  { %v1047_v15 = vpop.permute.xlu1 %1046 }
 0x4ff   :  { %v1056_v19 = vsel %vm142_vm2, %v711_v17, %v1047_v15 }
 0x506   :  { %v1050_v16 = vpop.permute.xlu1 %1049 }
 0x507   :  { %v1058_v20 = vsel %vm596_vm5, %v1056_v19, %v1050_v16 }
 0x50e   :  { %v1053_v21 = vpop.permute.xlu1 %1052 }
 0x50f   :  { %v1060_v24 = vsel %vm599_vm4, %v1058_v20, %v1053_v21 }
 0x510   :  { %v1062_v27 = vrot.slane %v1060_v24, 4 }
 0x512   :  { %v592_v28 = vpop.permute.xlu1 %591 }
 0x513   :  { %v601_v29 = vsel %vm599_vm4, %v598_v26, %v592_v28 }
 0x514   :  { %v1064_v30 = vsel %vm206_vm3, %v601_v29, %v1062_v27 }
 0x515   :  { %1323 = vmatmul.mubr.msk.bf16.vlgmr.msra.gmra.mxu1 %vm93_vm1, %v1064_v30 }
 0x5d5   :  { %v1124_v32 = vpop.f32.mrf.mxu1 }
 0x5d6   :  { %v1125_v33 = vadd.f32 %v1172_v31, %v1124_v32 }
 0x5d7   :  { %v1324_v34 = vpop.f32.mrf.mxu1 }
 0x5d8   :  { %1131 = vst.msk [vmem:[#allocation8] sm:$0xff] %vm93_vm1, %v1125_v33 }
 0x5d9   :  { %v1127_v35 = vpop.f32.mrf.mxu1 }
 0x5da   :  { %v1128_v36 = vadd.f32 %v1172_v31, %v1127_v35 }
 0x5db   :  { %v1325_v37 = vpop.f32.mrf.mxu1 }
 0x5dc   :  { %1132 = vst.msk [vmem:[#allocation8 + $0x8] sm:$0xff] %vm93_vm1, %v1128_v36 }
 0x5dd   :  { %1456 = shalt.err (!%p1453_p5)
}
 0x5de   :  { %s1492_s4 = smov 128  }
 0x5df   :  { %1144 = dma.vmem_to_hbm [thread:$0]  %s1139_s24, 256, %s1747_s5, [#allocation4], %s1492_s4, %s1492_s4, %s1488_s18  }
 0x5e0   :  { %1469 = dma.done.wait [#allocation4], 256  }
 0x5e1   :  { %1470 = vsyncadd [#allocation4], 4294967040 }
 0x5e2   :  { %1148 = vsyncpa [#allocation3], 1 }
 0x5e3   :  { %1149 = vsyncpa [#allocation6], 1 }
 0x5e4   :  { %1150 = vsyncpa [#allocation4], 1 }

</bundles_post_ra>
